<compile_context>
chip_gen: v5e
topology: v5e:2x2
jax: 0.10.0
libtpu: 0.0.40
codegen_flags: <defaults>
</compile_context>

<pallas_src>
from functools import partial

import jax
import jax.numpy as jnp
from jax.experimental import pallas as pl
from jax.experimental.pallas import tpu as pltpu

BETA = 1.0  # matches Swish(beta=1.0); no learnable parameters in this module
_MAX_BLOCK_BYTES = 4 * 1024 * 1024  # ~4 MiB blocks: at the 85% HBM-roofline plateau


def _swish_kernel(x_ref, o_ref):
    x = x_ref[...].astype(jnp.float32)
    z = x if BETA == 1.0 else x * BETA
    # sigmoid(z) = 0.5 * (1 + tanh(z/2)); a single EUP op (tanh) per element,
    # mathematically exact, the mul/add co-issue in free VALU slots.
    sig = 0.5 * (jnp.tanh(0.5 * z) + 1.0)
    o_ref[...] = (x * sig).astype(o_ref.dtype)


def _sublane_pack(itemsize):
    if itemsize >= 4:
        return 8
    if itemsize == 2:
        return 16
    return 32


def _round_up(v, m):
    return ((v + m - 1) // m) * m


def _choose_row_tile(rows, sub, max_tile_rows):
    """Row tile (multiple of `sub`, <= max_tile_rows) giving an even, balanced grid."""
    if rows <= sub:
        return rows  # single full-extent block
    if rows <= max_tile_rows:
        # One block would fit; split into 4 (or 2) parallel steps so v7x's two
        # TensorCores each get >= 1 (ideally >= 2) pipelined steps.
        for target_grid in (4, 2):
            if rows < target_grid * sub:
                continue
            tile = _round_up(pl.cdiv(rows, target_grid), sub)
            if pl.cdiv(rows, tile) == target_grid:
                return tile
        return rows
    # rows > max_tile_rows: prefer an exact divisor (no masked partial last
    # block) that also yields an even grid for megacore balance.
    best = None
    for cand in range(max_tile_rows, sub - 1, -sub):
        if rows % cand == 0:
            if (rows // cand) % 2 == 0:
                return cand
            if best is None:
                best = cand
    if best is not None:
        return best
    # Fallback: even grid with a masked partial last block.
    tile = max_tile_rows
    while tile > sub and pl.cdiv(rows, tile) % 2 != 0:
        tile -= sub
    return tile


def _swish_aligned(x2d, rows, L, row_tile, itemsize):
    n = rows * L
    return pl.pallas_call(
        _swish_kernel,
        out_shape=jax.ShapeDtypeStruct((rows, L), x2d.dtype),
        grid_spec=pltpu.PrefetchScalarGridSpec(
            num_scalar_prefetch=0,
            grid=(pl.cdiv(rows, row_tile),),
            in_specs=[pl.BlockSpec((row_tile, L), lambda i: (i, 0))],
            out_specs=pl.BlockSpec((row_tile, L), lambda i: (i, 0)),
        ),
        compiler_params=pltpu.CompilerParams(
            dimension_semantics=("parallel",),
            vmem_limit_bytes=32 * 1024 * 1024,
        ),
        cost_estimate=pl.CostEstimate(
            flops=4 * n,
            transcendentals=n,
            bytes_accessed=2 * n * itemsize,
        ),
    )(x2d)


def _swish_impl(x):
    """Elementwise swish(x) = x * sigmoid(BETA * x) for any shape / dtype."""
    orig_shape = x.shape
    orig_dtype = x.dtype
    total = int(x.size)
    itemsize = x.dtype.itemsize
    sub = _sublane_pack(itemsize)

    if total == 0:
        return x

    x_flat = jnp.reshape(x, (-1,))

    # ---- 128-aligned prefix goes through the kernel; tiny tail stays in jnp
    aligned = (total // 128) * 128
    if aligned == 0:
        z = x_flat.astype(jnp.float32) * BETA
        out = (x_flat.astype(jnp.float32) * (0.5 * (jnp.tanh(0.5 * z) + 1.0)))
        return jnp.reshape(out.astype(orig_dtype), orig_shape)

    # ---- pick the widest lane-dense slab (rows, L) that divides the prefix
    L = 128
    for cand in (2048, 1024, 512, 256, 128):
        if aligned % cand == 0:
            L = cand
            break
    rows = aligned // L
    x2d = jnp.reshape(x_flat[:aligned], (rows, L))

    # ---- row tile: <= ~4 MiB per block, multiple of sublane pack, balanced grid
    max_tile_rows = max(sub, _MAX_BLOCK_BYTES // (L * itemsize))
    max_tile_rows -= max_tile_rows % sub
    row_tile = _choose_row_tile(rows, sub, max_tile_rows)

    out2d = _swish_aligned(x2d, rows, L, row_tile, itemsize)
    out_flat = jnp.reshape(out2d, (-1,))

    if aligned < total:
        tail = x_flat[aligned:].astype(jnp.float32)
        z = tail if BETA == 1.0 else tail * BETA
        tail_out = (tail * (0.5 * (jnp.tanh(0.5 * z) + 1.0))).astype(orig_dtype)
        out_flat = jnp.concatenate([out_flat, tail_out])

    return jnp.reshape(out_flat, orig_shape)


swish = jax.jit(_swish_impl)


if __name__ == "__main__":
    key = jax.random.PRNGKey(0)
    # NCHW input consistent with a conv-net activation: batch=2, channels=4, 16x16 spatial.
    x = jax.random.normal(key, (2, 4, 16, 16), dtype=jnp.float32)

    y = swish(x)
    jax.block_until_ready(y)

    # Reference check against plain-JAX swish.
    y_ref = x * jax.nn.sigmoid(BETA * x)
    assert y.shape == x.shape and y.dtype == x.dtype
    assert jnp.max(jnp.abs(y - y_ref)) < 1e-3

    # Secondary check: ragged element count exercises the aligned-prefix + jnp-tail path.
    x2 = jax.random.normal(jax.random.PRNGKey(1), (2, 3, 17, 13), dtype=jnp.float32)
    y2 = swish(x2)
    jax.block_until_ready(y2)
    y2_ref = x2 * jax.nn.sigmoid(BETA * x2)
    assert y2.shape == x2.shape and jnp.max(jnp.abs(y2 - y2_ref)) < 1e-3

    print("KERNEL_OK")
</pallas_src>

<mosaic_0001>
module attributes {stable_mosaic.version = 11 : i64} {
  func.func @_swish_kernel(%arg0: i32, %arg1: memref<1x2048xf32, #tpu.memory_space<vmem>>, %arg2: memref<1x2048xf32, #tpu.memory_space<vmem>>) attributes {dimension_semantics = [#tpu.dimension_semantics<parallel>], iteration_bounds = array<i64: 1>, scalar_prefetch = 0 : i64, scratch_operands = 0 : i64, tpu.core_type = #tpu.core_type<tc>, window_params = [{transform_indices = @transform_0, window_bounds = array<i64: 1, 2048>}, {transform_indices = @transform_1, window_bounds = array<i64: 1, 2048>}]} {
    %c0 = arith.constant 0 : index
    %c0_0 = arith.constant 0 : index
    %0 = vector.load %arg1[%c0, %c0_0] : memref<1x2048xf32, #tpu.memory_space<vmem>>, vector<1x2048xf32>
    %cst = arith.constant 5.000000e-01 : f32
    %1 = vector.broadcast %cst : f32 to vector<1x2048xf32>
    %2 = arith.mulf %1, %0 : vector<1x2048xf32>
    %3 = math.tanh %2 : vector<1x2048xf32>
    %cst_1 = arith.constant 1.000000e+00 : f32
    %4 = vector.broadcast %cst_1 : f32 to vector<1x2048xf32>
    %5 = arith.addf %3, %4 : vector<1x2048xf32>
    %cst_2 = arith.constant 5.000000e-01 : f32
    %6 = vector.broadcast %cst_2 : f32 to vector<1x2048xf32>
    %7 = arith.mulf %6, %5 : vector<1x2048xf32>
    %8 = arith.mulf %0, %7 : vector<1x2048xf32>
    %c0_3 = arith.constant 0 : index
    %c0_4 = arith.constant 0 : index
    %9 = vector.load %arg2[%c0_3, %c0_4] : memref<1x2048xf32, #tpu.memory_space<vmem>>, vector<1x2048xf32>
    tpu.vector_store %arg2[%c0_3, %c0_4], %8 {strides = array<i32>} : memref<1x2048xf32, #tpu.memory_space<vmem>>, vector<1x2048xf32>,
    return
  }
  func.func @transform_0(%arg0: i32) -> (i32, i32) {
    %c0_i32 = arith.constant 0 : i32
    %c0_i32_0 = arith.constant 0 : i32
    return %arg0, %c0_i32 : i32, i32
  }
  func.func @transform_1(%arg0: i32) -> (i32, i32) {
    %c0_i32 = arith.constant 0 : i32
    %c0_i32_0 = arith.constant 0 : i32
    return %arg0, %c0_i32 : i32, i32
  }
}

</mosaic_0001>

<bundles_post_ra>
// kernel: _swish_impl.1
= control target key start
LH: loop header
LB: loop body
LE: loop exit
PB: predicated region body
PF: predicated region fallthrough
CT: control target
= control target key end

     0   :  { %s52_s0 = inlined_call_operand.vmem [shape: f32[1,2048], index: 0, kind: input, shape index: {}]   ;;  %s53_s1 = inlined_call_operand.vmem [shape: f32[1,2048], index: 1, kind: output, shape index: {}]  }
   0x1   :  { %v8_v0 = vld [vmem:[%s52_s0] sm:$0xff]  ;;  %v9_v1 = vld [vmem:[%s52_s0 + $0x8] sm:$0xff] }
   0x2   :  { %v10_v2 = vmul.f32 0.5, %v8_v0  ;;  %v11_v3 = vmul.f32 0.5, %v9_v1 }
   0x4   :  { %26 = vtanh.f32 %v10_v2 }
   0x5   :  { %28 = vtanh.f32 %v11_v3 }
   0xa   :  { %v27_v4 = vpop.eup %26 }
   0xb   :  { %v29_v5 = vpop.eup %28  ;;  %v14_v6 = vadd.f32 1.0, %v27_v4 }
   0xc   :  { %v15_v7 = vadd.f32 1.0, %v29_v5 }
   0xd   :  { %v16_v8 = vmul.f32 0.5, %v14_v6 }
   0xe   :  { %v17_v9 = vmul.f32 0.5, %v15_v7 }
   0xf   :  { %v18_v10 = vmul.f32 %v16_v8, %v8_v0 }
  0x10   :  { %v19_v11 = vmul.f32 %v17_v9, %v9_v1 }
  0x11   :  { %20 = vst [vmem:[%s53_s1] sm:$0xff] %v18_v10 }
  0x12   :  { %21 = vst [vmem:[%s53_s1 + $0x8] sm:$0xff] %v19_v11 }

</bundles_post_ra>
